<compile_context>
chip_gen: v6e
topology: v6e:2x2x1
jax: 0.10.0
libtpu: 0.0.40
codegen_flags: <defaults>
</compile_context>

<pallas_src>
import functools

import jax
import jax.numpy as jnp
from jax.experimental import pallas as pl
from jax.experimental.pallas import tpu as pltpu


def _round_up(v, m):
    return (v + m - 1) // m * m


def _res_kernel(x_ref, w1_ref, b1_ref, w2_ref, b2_ref, o_ref, *, d_out_pad,
                compute_dtype):
    """Fused Res forward on one (TM, d_in_pad) batch tile.

    out = sin(sin(x @ W1 + b1) @ W2 + b2) + pad_or_truncate(x, d_out_pad)

    Matmuls run on the MXU in `compute_dtype` (bf16 by default) with f32
    accumulation; sin, bias adds and the residual stay f32 on the VPU/EUP.
    """
    x = x_ref[...]                                   # (TM, d_in_pad), f32
    xc = x.astype(compute_dtype)

    h1 = jnp.sin(
        jnp.dot(xc, w1_ref[...], preferred_element_type=jnp.float32)
        + b1_ref[...]
    )
    h2 = jnp.sin(
        jnp.dot(h1.astype(compute_dtype), w2_ref[...],
                preferred_element_type=jnp.float32)
        + b2_ref[...]
    )

    # Residual: x @ eye(d_in, d_out) == x truncated (d_in > d_out) or
    # zero-padded (d_in < d_out) to d_out columns.  Both padded widths are
    # multiples of 128, so this is a lane-aligned slice / concat (no MXU).
    d_in_pad = x.shape[-1]
    xf = x.astype(jnp.float32)
    if d_in_pad >= d_out_pad:
        res = xf[:, :d_out_pad]
    else:
        res = jnp.concatenate(
            [xf, jnp.zeros((xf.shape[0], d_out_pad - d_in_pad), jnp.float32)],
            axis=-1,
        )

    o_ref[...] = (h2 + res).astype(o_ref.dtype)


@functools.partial(jax.jit, static_argnames=("compute_dtype",))
def res_forward(x, w1, b1, w2, b2, *, compute_dtype=jnp.bfloat16):
    n, d_in = x.shape
    d_out = w1.shape[1]

    # Lane-dense feature dims; sublane/batch tile that keeps everything in VMEM.
    d_in_p = _round_up(d_in, 128)
    d_out_p = _round_up(d_out, 128)
    tm = min(256, _round_up(n, 8))
    n_p = _round_up(n, tm)

    # Pad once in the wrapper.  Weights go to compute_dtype (halves HBM/VMEM),
    # x and biases stay f32 so the residual and epilogue are exact.
    x_p = jnp.pad(x, ((0, n_p - n), (0, d_in_p - d_in)))
    w1_p = jnp.pad(w1, ((0, d_in_p - d_in), (0, d_out_p - d_out))).astype(compute_dtype)
    w2_p = jnp.pad(w2, ((0, d_out_p - d_out), (0, d_out_p - d_out))).astype(compute_dtype)
    b1_p = jnp.pad(b1, ((0, 0), (0, d_out_p - d_out))).astype(jnp.float32)
    b2_p = jnp.pad(b2, ((0, 0), (0, d_out_p - d_out))).astype(jnp.float32)

    grid = (n_p // tm,)
    kernel = functools.partial(_res_kernel, d_out_pad=d_out_p,
                               compute_dtype=compute_dtype)

    # Advisory cost estimate for XLA's scheduler around the custom call.
    flops = 2 * n_p * d_in_p * d_out_p + 2 * n_p * d_out_p * d_out_p
    transcendentals = 2 * n_p * d_out_p
    bytes_accessed = (
        x_p.size * x_p.dtype.itemsize
        + w1_p.size * w1_p.dtype.itemsize
        + w2_p.size * w2_p.dtype.itemsize
        + b1_p.size * 4 + b2_p.size * 4
        + n_p * d_out_p * x.dtype.itemsize
    )

    # VMEM budget: double-buffered x/out tiles + resident weights + headroom.
    # (Not hit at these shapes; for very large d_out on v7x's 64 MiB VMEM,
    # tile W2 along its output columns instead of keeping it fully resident.)
    itemsize_c = jnp.dtype(compute_dtype).itemsize
    vmem_est = (
        2 * tm * d_in_p * 4
        + 2 * tm * d_out_p * 4
        + 2 * (d_in_p + d_out_p) * d_out_p * itemsize_c
        + 4 * d_out_p * 4
        + 6 * tm * d_out_p * 4
    )
    vmem_limit = min(max(32 * 1024 * 1024, 2 * vmem_est), 64 * 1024 * 1024)

    out_p = pl.pallas_call(
        kernel,
        out_shape=jax.ShapeDtypeStruct((n_p, d_out_p), x.dtype),
        grid_spec=pltpu.PrefetchScalarGridSpec(
            num_scalar_prefetch=0,
            grid=grid,
            in_specs=[
                pl.BlockSpec((tm, d_in_p), lambda i: (i, 0)),       # x tile
                pl.BlockSpec((d_in_p, d_out_p), lambda i: (0, 0)),  # W1 resident
                pl.BlockSpec((1, d_out_p), lambda i: (0, 0)),       # b1 resident
                pl.BlockSpec((d_out_p, d_out_p), lambda i: (0, 0)), # W2 resident
                pl.BlockSpec((1, d_out_p), lambda i: (0, 0)),       # b2 resident
            ],
            out_specs=pl.BlockSpec((tm, d_out_p), lambda i: (i, 0)),
        ),
        compiler_params=pltpu.CompilerParams(
            dimension_semantics=("parallel",),
            vmem_limit_bytes=vmem_limit,
        ),
        cost_estimate=pl.CostEstimate(
            flops=flops,
            transcendentals=transcendentals,
            bytes_accessed=bytes_accessed,
        ),
    )(x_p, w1_p, b1_p, w2_p, b2_p)

    return out_p[:n, :d_out]


def make_res_params(key, input_size, output_size, dtype=jnp.float32):
    """Deterministic init mimicking torch.nn.Linear default (uniform +-1/sqrt(fan_in)).
    Weights are stored already transposed: (in, out)."""
    k1, k2, k3, k4 = jax.random.split(key, 4)
    bound1 = 1.0 / jnp.sqrt(jnp.array(input_size, dtype))
    bound2 = 1.0 / jnp.sqrt(jnp.array(output_size, dtype))
    w1 = jax.random.uniform(k1, (input_size, output_size), dtype, -bound1, bound1)
    b1 = jax.random.uniform(k2, (1, output_size), dtype, -bound1, bound1)
    w2 = jax.random.uniform(k3, (output_size, output_size), dtype, -bound2, bound2)
    b2 = jax.random.uniform(k4, (1, output_size), dtype, -bound2, bound2)
    return w1, b1, w2, b2


def res_reference(x, w1, b1, w2, b2):
    d_in = x.shape[1]
    d_out = w1.shape[1]
    h = jnp.sin(x @ w1 + b1)
    h = jnp.sin(h @ w2 + b2)
    eye = jnp.eye(d_in, d_out, dtype=x.dtype)
    return h + x @ eye


if __name__ == "__main__":
    key = jax.random.PRNGKey(0)
    k_x1, k_p1, k_x2, k_p2, k_x3, k_p3 = jax.random.split(key, 6)

    # Primary config (matches the module's small-shape usage).
    batch, input_size, output_size = 8, 16, 32
    x = jax.random.normal(k_x1, (batch, input_size), jnp.float32)
    params = make_res_params(k_p1, input_size, output_size)
    ref = res_reference(x, *params)

    # f32 matmul path: should match tightly.
    out_f32 = jax.block_until_ready(
        res_forward(x, *params, compute_dtype=jnp.float32))
    assert out_f32.shape == (batch, output_size)
    assert jnp.allclose(out_f32, ref, atol=1e-4, rtol=1e-4)

    # Default bf16-matmul path: f32 accumulation, looser tolerance.
    out_bf16 = jax.block_until_ready(res_forward(x, *params))
    assert out_bf16.shape == (batch, output_size)
    assert jnp.allclose(out_bf16, ref, atol=3e-2, rtol=3e-2)

    # d_in > d_out: residual is a column truncation (slice path).
    n2, in2, out2_sz = 8, 160, 32
    x2 = jax.random.normal(k_x2, (n2, in2), jnp.float32)
    p2 = make_res_params(k_p2, in2, out2_sz)
    out2 = jax.block_until_ready(res_forward(x2, *p2, compute_dtype=jnp.float32))
    assert jnp.allclose(out2, res_reference(x2, *p2), atol=1e-4, rtol=1e-4)

    # d_in < d_out with different 128-padded widths: residual zero-pad path.
    n3, in3, out3_sz = 8, 16, 200
    x3 = jax.random.normal(k_x3, (n3, in3), jnp.float32)
    p3 = make_res_params(k_p3, in3, out3_sz)
    out3 = jax.block_until_ready(res_forward(x3, *p3, compute_dtype=jnp.float32))
    assert jnp.allclose(out3, res_reference(x3, *p3), atol=1e-4, rtol=1e-4)

    print("KERNEL_OK")
</pallas_src>

<mosaic_0001>
module attributes {stable_mosaic.version = 11 : i64} {
  func.func @_res_kernel(%arg0: i32, %arg1: memref<8x128xf32, #tpu.memory_space<vmem>>, %arg2: memref<128x128xf32, #tpu.memory_space<vmem>>, %arg3: memref<1x128xf32, #tpu.memory_space<vmem>>, %arg4: memref<128x128xf32, #tpu.memory_space<vmem>>, %arg5: memref<1x128xf32, #tpu.memory_space<vmem>>, %arg6: memref<8x128xf32, #tpu.memory_space<vmem>>) attributes {dimension_semantics = [#tpu.dimension_semantics<parallel>], iteration_bounds = array<i64: 1>, scalar_prefetch = 0 : i64, scratch_operands = 0 : i64, tpu.core_type = #tpu.core_type<tc>, window_params = [{transform_indices = @transform_0, window_bounds = array<i64: 8, 128>}, {pipeline_mode = #tpu.pipeline_mode<synchronous>, transform_indices = @transform_1, window_bounds = array<i64: 128, 128>}, {pipeline_mode = #tpu.pipeline_mode<synchronous>, transform_indices = @transform_2, window_bounds = array<i64: 1, 128>}, {pipeline_mode = #tpu.pipeline_mode<synchronous>, transform_indices = @transform_3, window_bounds = array<i64: 128, 128>}, {pipeline_mode = #tpu.pipeline_mode<synchronous>, transform_indices = @transform_4, window_bounds = array<i64: 1, 128>}, {transform_indices = @transform_5, window_bounds = array<i64: 8, 128>}]} {
    %c0 = arith.constant 0 : index
    %c0_0 = arith.constant 0 : index
    %0 = vector.load %arg1[%c0, %c0_0] : memref<8x128xf32, #tpu.memory_space<vmem>>, vector<8x128xf32>
    %c0_1 = arith.constant 0 : index
    %c0_2 = arith.constant 0 : index
    %1 = vector.load %arg2[%c0_1, %c0_2] : memref<128x128xf32, #tpu.memory_space<vmem>>, vector<128x128xf32>
    %cst = arith.constant dense<0.000000e+00> : vector<8x128xf32>
    %2 = tpu.matmul %0, %1, %cst {dimension_numbers = #tpu.dot_dimension_numbers<[1], [0], [0], [1], [0, 0, 1, 1], [], []>} : vector<8x128xf32>, vector<128x128xf32>, vector<8x128xf32> -> vector<8x128xf32>
    %c0_3 = arith.constant 0 : index
    %c0_4 = arith.constant 0 : index
    %3 = vector.load %arg3[%c0_3, %c0_4] : memref<1x128xf32, #tpu.memory_space<vmem>>, vector<1x128xf32>
    %4 = vector.broadcast %3 : vector<1x128xf32> to vector<8x128xf32>
    %5 = arith.addf %2, %4 : vector<8x128xf32>
    %6 = math.sin %5 : vector<8x128xf32>
    %c0_5 = arith.constant 0 : index
    %c0_6 = arith.constant 0 : index
    %7 = vector.load %arg4[%c0_5, %c0_6] : memref<128x128xf32, #tpu.memory_space<vmem>>, vector<128x128xf32>
    %cst_7 = arith.constant dense<0.000000e+00> : vector<8x128xf32>
    %8 = tpu.matmul %6, %7, %cst_7 {dimension_numbers = #tpu.dot_dimension_numbers<[1], [0], [0], [1], [0, 0, 1, 1], [], []>} : vector<8x128xf32>, vector<128x128xf32>, vector<8x128xf32> -> vector<8x128xf32>
    %c0_8 = arith.constant 0 : index
    %c0_9 = arith.constant 0 : index
    %9 = vector.load %arg5[%c0_8, %c0_9] : memref<1x128xf32, #tpu.memory_space<vmem>>, vector<1x128xf32>
    %10 = vector.broadcast %9 : vector<1x128xf32> to vector<8x128xf32>
    %11 = arith.addf %8, %10 : vector<8x128xf32>
    %12 = math.sin %11 : vector<8x128xf32>
    %13 = arith.addf %12, %0 : vector<8x128xf32>
    %c0_10 = arith.constant 0 : index
    %c0_11 = arith.constant 0 : index
    %14 = vector.load %arg6[%c0_10, %c0_11] : memref<8x128xf32, #tpu.memory_space<vmem>>, vector<8x128xf32>
    tpu.vector_store %arg6[%c0_10, %c0_11], %13 {strides = array<i32>} : memref<8x128xf32, #tpu.memory_space<vmem>>, vector<8x128xf32>,
    return
  }
  func.func @transform_0(%arg0: i32) -> (i32, i32) {
    %c0_i32 = arith.constant 0 : i32
    %c0_i32_0 = arith.constant 0 : i32
    return %arg0, %c0_i32 : i32, i32
  }
  func.func @transform_1(%arg0: i32) -> (i32, i32) {
    %c0_i32 = arith.constant 0 : i32
    %c0_i32_0 = arith.constant 0 : i32
    %c0_i32_1 = arith.constant 0 : i32
    return %c0_i32, %c0_i32_0 : i32, i32
  }
  func.func @transform_2(%arg0: i32) -> (i32, i32) {
    %c0_i32 = arith.constant 0 : i32
    %c0_i32_0 = arith.constant 0 : i32
    %c0_i32_1 = arith.constant 0 : i32
    return %c0_i32, %c0_i32_0 : i32, i32
  }
  func.func @transform_3(%arg0: i32) -> (i32, i32) {
    %c0_i32 = arith.constant 0 : i32
    %c0_i32_0 = arith.constant 0 : i32
    %c0_i32_1 = arith.constant 0 : i32
    return %c0_i32, %c0_i32_0 : i32, i32
  }
  func.func @transform_4(%arg0: i32) -> (i32, i32) {
    %c0_i32 = arith.constant 0 : i32
    %c0_i32_0 = arith.constant 0 : i32
    %c0_i32_1 = arith.constant 0 : i32
    return %c0_i32, %c0_i32_0 : i32, i32
  }
  func.func @transform_5(%arg0: i32) -> (i32, i32) {
    %c0_i32 = arith.constant 0 : i32
    %c0_i32_0 = arith.constant 0 : i32
    return %arg0, %c0_i32 : i32, i32
  }
}

</mosaic_0001>

<bundles_post_ra>
// kernel: res_forward.1
= control target key start
LH: loop header
LB: loop body
LE: loop exit
PB: predicated region body
PF: predicated region fallthrough
CT: control target
= control target key end

     0   :  { %v593_v1 = vmov 0.0   ;;  %vm594_vm0 = vmmov 0   ;;  %s842_s0 = inlined_call_operand.vmem [shape: f32[8,128], index: 0, kind: input, shape index: {}]   ;;  %s843_s1 = inlined_call_operand.vmem [shape: f32[128,128], index: 1, kind: input, shape index: {}]   ;;  %s844_s2 = inlined_call_operand.vmem [shape: f32[1,128], index: 2, kind: input, shape index: {}]   ;;  %s845_s3 = inlined_call_operand.vmem [shape: f32[128,128], index: 3, kind: input, shape index: {}]   ;;  %s846_s4 = inlined_call_operand.vmem [shape: f32[1,128], index: 4, kind: input, shape index: {}]   ;;  %s847_s5 = inlined_call_operand.hbm [shape: f32[8,128], index: 5, kind: output, shape index: {}]  }
   0x1   :  { %v37_v0 = vld [vmem:[%s843_s1 + $0x78] sm:$0xff]  ;;  %476 = vmatprep.subr.mxu0 %v593_v1  ;;  %v36_v2 = vld [vmem:[%s843_s1 + $0x70] sm:$0xff]  ;;  %508 = vmatprep.mubr.msk.f32.mxu0 %vm594_vm0, %v593_v1  ;;  %v35_v3 = vld [vmem:[%s843_s1 + $0x68] sm:$0xff] }
   0x2   :  { %477 = vmatpush3.msra.mxu0 %v37_v0  ;;  %511 = vmatprep.subr.mxu1 %v593_v1  ;;  %v34_v4 = vld [vmem:[%s843_s1 + $0x60] sm:$0xff] }
   0x3   :  { %478 = vmatprep.subr.mxu0 %v593_v1  ;;  %543 = vmatprep.mubr.msk.f32.mxu1 %vm594_vm0, %v593_v1 }
   0x4   :  { %479 = vmatpush3.msra.mxu0 %v36_v2 }
   0x5   :  { %480 = vmatprep.subr.mxu0 %v593_v1 }
   0x6   :  { %481 = vmatpush3.msra.mxu0 %v35_v3 }
   0x7   :  { %10 = vsyncpa [#allocation3], 0  ;;  %482 = vmatprep.subr.mxu0 %v593_v1  ;;  %v33_v5 = vld [vmem:[%s843_s1 + $0x58] sm:$0xff]  ;;  %v32_v6 = vld [vmem:[%s843_s1 + $0x50] sm:$0xff]  ;;  %v595_v48 = vmov 683565275  }
   0x8   :  { %483 = vmatpush3.msra.mxu0 %v34_v4  ;;  %v31_v7 = vld [vmem:[%s843_s1 + $0x48] sm:$0xff]  ;;  %v30_v8 = vld [vmem:[%s843_s1 + $0x40] sm:$0xff]  ;;  %v29_v9 = vld [vmem:[%s843_s1 + $0x38] sm:$0xff]  ;;  %v596_v50 = vmov 2475754826  }
   0x9   :  { %484 = vmatprep.subr.mxu0 %v593_v1  ;;  %v28_v10 = vld [vmem:[%s843_s1 + $0x30] sm:$0xff]  ;;  %v27_v11 = vld [vmem:[%s843_s1 + $0x28] sm:$0xff]  ;;  %v26_v12 = vld [vmem:[%s843_s1 + $0x20] sm:$0xff]  ;;  %v597_v53 = vmov 2131351028  }
   0xa   :  { %485 = vmatpush3.msra.mxu0 %v33_v5  ;;  %v25_v13 = vld [vmem:[%s843_s1 + $0x18] sm:$0xff]  ;;  %v24_v14 = vld [vmem:[%s843_s1 + $0x10] sm:$0xff]  ;;  %v23_v15 = vld [vmem:[%s843_s1 + $0x8] sm:$0xff]  ;;  %v598_v56 = vmov 2102212464  }
   0xb   :  { %486 = vmatprep.subr.mxu0 %v593_v1  ;;  %v22_v16 = vld [vmem:[%s843_s1] sm:$0xff]  ;;  %v234_v18 = vld [vmem:[%s845_s3 + $0x78] sm:$0xff]  ;;  %v233_v19 = vld [vmem:[%s845_s3 + $0x70] sm:$0xff]  ;;  %v599_v59 = vmov 920167782  }
   0xc   :  { %487 = vmatpush3.msra.mxu0 %v32_v6  ;;  %v701_v17 = vld [vmem:[%s842_s0] sm:$0xff]  ;;  %512 = vmatpush3.msra.mxu1 %v234_v18  ;;  %v232_v20 = vld [vmem:[%s845_s3 + $0x68] sm:$0xff]  ;;  %v230_v22 = vld [vmem:[%s845_s3 + $0x58] sm:$0xff]  ;;  %v600_v62 = vmov 1326507024  }
   0xd   :  { %488 = vmatprep.subr.mxu0 %v593_v1  ;;  %513 = vmatprep.subr.mxu1 %v593_v1  ;;  %v231_v21 = vld [vmem:[%s845_s3 + $0x60] sm:$0xff]  ;;  %v229_v23 = vld [vmem:[%s845_s3 + $0x50] sm:$0xff]  ;;  %v228_v24 = vld [vmem:[%s845_s3 + $0x48] sm:$0xff] }
   0xe   :  { %489 = vmatpush3.msra.mxu0 %v31_v7  ;;  %514 = vmatpush3.msra.mxu1 %v233_v19  ;;  %v227_v25 = vld [vmem:[%s845_s3 + $0x40] sm:$0xff]  ;;  %v226_v26 = vld [vmem:[%s845_s3 + $0x38] sm:$0xff]  ;;  %v225_v27 = vld [vmem:[%s845_s3 + $0x30] sm:$0xff] }
   0xf   :  { %490 = vmatprep.subr.mxu0 %v593_v1  ;;  %515 = vmatprep.subr.mxu1 %v593_v1  ;;  %v224_v28 = vld [vmem:[%s845_s3 + $0x28] sm:$0xff]  ;;  %v223_v29 = vld [vmem:[%s845_s3 + $0x20] sm:$0xff]  ;;  %v222_v30 = vld [vmem:[%s845_s3 + $0x18] sm:$0xff] }
  0x10   :  { %491 = vmatpush3.msra.mxu0 %v30_v8  ;;  %516 = vmatpush3.msra.mxu1 %v232_v20  ;;  %v221_v31 = vld [vmem:[%s845_s3 + $0x10] sm:$0xff]  ;;  %v220_v32 = vld [vmem:[%s845_s3 + $0x8] sm:$0xff]  ;;  %v219_v33 = vld [vmem:[%s845_s3] sm:$0xff] }
  0x11   :  { %492 = vmatprep.subr.mxu0 %v593_v1  ;;  %517 = vmatprep.subr.mxu1 %v593_v1  ;;  %v432_v34 = vld [vmem:[%s844_s2] ss:$0 sm:$0xff] }
  0x12   :  { %493 = vmatpush3.msra.mxu0 %v29_v9  ;;  %518 = vmatpush3.msra.mxu1 %v231_v21 }
  0x13   :  { %494 = vmatprep.subr.mxu0 %v593_v1  ;;  %519 = vmatprep.subr.mxu1 %v593_v1 }
  0x14   :  { %495 = vmatpush3.msra.mxu0 %v28_v10  ;;  %520 = vmatpush3.msra.mxu1 %v230_v22 }
  0x15   :  { %496 = vmatprep.subr.mxu0 %v593_v1  ;;  %521 = vmatprep.subr.mxu1 %v593_v1 }
  0x16   :  { %497 = vmatpush3.msra.mxu0 %v27_v11  ;;  %522 = vmatpush3.msra.mxu1 %v229_v23 }
  0x17   :  { %498 = vmatprep.subr.mxu0 %v593_v1  ;;  %523 = vmatprep.subr.mxu1 %v593_v1 }
  0x18   :  { %499 = vmatpush3.msra.mxu0 %v26_v12  ;;  %524 = vmatpush3.msra.mxu1 %v228_v24 }
  0x19   :  { %500 = vmatprep.subr.mxu0 %v593_v1  ;;  %525 = vmatprep.subr.mxu1 %v593_v1 }
  0x1a   :  { %501 = vmatpush3.msra.mxu0 %v25_v13  ;;  %526 = vmatpush3.msra.mxu1 %v227_v25 }
  0x1b   :  { %502 = vmatprep.subr.mxu0 %v593_v1  ;;  %527 = vmatprep.subr.mxu1 %v593_v1 }
  0x1c   :  { %503 = vmatpush3.msra.mxu0 %v24_v14  ;;  %528 = vmatpush3.msra.mxu1 %v226_v26 }
  0x1d   :  { %504 = vmatprep.subr.mxu0 %v593_v1  ;;  %529 = vmatprep.subr.mxu1 %v593_v1 }
  0x1e   :  { %505 = vmatpush3.msra.mxu0 %v23_v15  ;;  %530 = vmatpush3.msra.mxu1 %v225_v27 }
  0x1f   :  { %506 = vmatprep.subr.mxu0 %v593_v1  ;;  %531 = vmatprep.subr.mxu1 %v593_v1 }
  0x20   :  { %507 = vmatpush3.msra.mxu0 %v22_v16  ;;  %532 = vmatpush3.msra.mxu1 %v224_v28 }
  0x21   :  { %509 = vmatmul.mubr.f32.vlgmr.msra.gmra.mxu0 %v701_v17  ;;  %533 = vmatprep.subr.mxu1 %v593_v1 }
  0x22   :  { %534 = vmatpush3.msra.mxu1 %v223_v29 }
  0x23   :  { %535 = vmatprep.subr.mxu1 %v593_v1 }
  0x24   :  { %536 = vmatpush3.msra.mxu1 %v222_v30 }
  0x25   :  { %537 = vmatprep.subr.mxu1 %v593_v1 }
  0x26   :  { %538 = vmatpush3.msra.mxu1 %v221_v31 }
  0x27   :  { %539 = vmatprep.subr.mxu1 %v593_v1 }
  0x28   :  { %540 = vmatpush3.msra.mxu1 %v220_v32 }
  0x29   :  { %541 = vmatprep.subr.mxu1 %v593_v1 }
  0x2a   :  { %542 = vmatpush3.msra.mxu1 %v219_v33 }
  0xe1   :  { %v111_v35 = vpop.f32.mrf.mxu0 }
  0xe2   :  { %v771_v36 = vadd.f32 %v432_v34, %v111_v35 }
  0xe3   :  { %v510_v37 = vpop.f32.mrf.mxu0 }
  0xe4   :  { %v118_v38 = vand.u32 2139095040, %v771_v36  ;;  %v115_v42 = vand.u32 2147483647, %v771_v36  ;;  %vm117_vm8 = vcmp.lt.s32.totalorder %v771_v36, 0  ;;  %vm207_vm13 = vweird.f32 %v771_v36 }
  0xe6   :  { %v119_v39 = vshrl.u32 %v118_v38, 23  ;;  %v122_v45 = vand.u32 8388607, %v115_v42  ;;  %vm116_vm9 = vcmp.le.f32.partialorder %v115_v42, 0.7853982 }
  0xe8   :  { %v433_v40 = vadd.s32 4294967169, %v119_v39  ;;  %v123_v0 = vor.u32 8388608, %v122_v45 }
  0xea   :  { %v125_v41 = vadd.s32 1, %v433_v40  ;;  %v163_v14 = vshll.u32 %v123_v0, 8 }
  0xec   :  { %vm126_vm1 = vcmp.gt.s32.totalorder %v125_v41, 0 }
  0xed   :  { %v127_v43 = vsel %vm126_vm1, %v125_v41, 0 }
  0xee   :  { %v129_v44 = vand.u32 31, %v127_v43  ;;  %v128_v47 = vshrl.u32 %v127_v43, 5 }
  0xf0   :  { %v130_v46 = vsub.s32 32, %v129_v44  ;;  %v132_v49 = vshll.u32 %v595_v48, %v129_v44  ;;  %v135_v51 = vshll.u32 %v596_v50, %v129_v44  ;;  %v138_v55 = vshll.u32 %v597_v53, %v129_v44 }
  0xf1   :  { %v141_v58 = vshll.u32 %v598_v56, %v129_v44  ;;  %v144_v61 = vshll.u32 %v599_v59, %v129_v44  ;;  %vm147_vm2 = vcmp.lt.s32.totalorder %v128_v47, 1  ;;  %vm150_vm3 = vcmp.lt.s32.totalorder %v128_v47, 4 }
  0xf2   :  { %v133_v52 = vshrl.u32 %v596_v50, %v130_v46  ;;  %v136_v54 = vshrl.u32 %v597_v53, %v130_v46  ;;  %v139_v57 = vshrl.u32 %v598_v56, %v130_v46  ;;  %v142_v60 = vshrl.u32 %v599_v59, %v130_v46 }
  0xf3   :  { %v145_v63 = vshrl.u32 %v600_v62, %v130_v46  ;;  %v131_v9 = vshrl.u32 %v595_v48, %v130_v46  ;;  %vm149_vm4 = vcmp.lt.s32.totalorder %v128_v47, 3  ;;  %vm148_vm5 = vcmp.lt.s32.totalorder %v128_v47, 2 }
  0xf4   :  { %v134_v1 = vor.u32 %v133_v52, %v132_v49  ;;  %v137_v2 = vor.u32 %v136_v54, %v135_v51  ;;  %v140_v3 = vor.u32 %v139_v57, %v138_v55  ;;  %v143_v4 = vor.u32 %v142_v60, %v141_v58 }
  0xf5   :  { %v146_v5 = vor.u32 %v145_v63, %v144_v61 }
  0xf6   :  { %v152_v6 = vsel %vm150_vm3, %v140_v3, 2102212464  ;;  %v155_v7 = vsel %vm147_vm2, %v134_v1, %v137_v2  ;;  %v159_v8 = vsel %vm147_vm2, %v137_v2, %v140_v3  ;;  %v156_v10 = vsel %vm150_vm3, %v143_v4, 920167782 }
  0xf7   :  { %v160_v11 = vsel %vm150_vm3, %v146_v5, 1326507024  ;;  %v157_v12 = vsel %vm149_vm4, %v140_v3, %v156_v10  ;;  %v151_v15 = vsel %vm147_vm2, %v131_v9, %v134_v1  ;;  %v153_v16 = vsel %vm149_vm4, %v137_v2, %v152_v6  ;;  %v437_v9 = vld [vmem:[%s846_s4] ss:$0 sm:$0xff]  ;;  %s601_s4 = smov [#allocation2]  }
  0xf8   :  { %v161_v13 = vsel %vm149_vm4, %v143_v4, %v160_v11  ;;  %v158_v18 = vsel %vm148_vm5, %v155_v7, %v157_v12  ;;  %v154_v24 = vsel %vm148_vm5, %v151_v15, %v153_v16  ;;  %s424_s7 = sshll.u32 %s601_s4, 4  ;;  %s425_s7 = int_to_ptr.vmem [resolvable:$true] %s424_s7 }
  0xf9   :  { %v162_v19 = vsel %vm148_vm5, %v159_v8, %v161_v13  ;;  %v791_v22 = vmul.u32.u64.low %v163_v14, %v158_v18  ;;  %v792_v23 = vmul.u32.u64.high %v163_v14, %v158_v18, %v791_v22  ;;  %v170_v26 = vmul.u32 %v163_v14, %v154_v24  ;;  %s571_s8 = scalar_lea.vmem %s425_s7, 128  ;;  %p576_p1 = scmp.lt.s32.totalorder %s425_s7, %s425_s7 }
  0xfa   :  { %v788_v20 = vmul.u32.u64.low %v163_v14, %v162_v19  ;;  %v789_v21 = vmul.u32.u64.high %v163_v14, %v162_v19, %v788_v20  ;;  %p572_p0 = scmp.ne.s32.totalorder %s425_s7, %s571_s8  ;;  %p577_p2 = scmp.lt.s32.totalorder %s571_s8, %s571_s8 }
  0xfb   :  { %v173_v25 = vadd.s32 1, %v792_v23 }
  0xfc   :  { %vm172_vm6 = vc.u32 %v789_v21, %v791_v22  ;;  %v171_v39 = vadd.s32 %v791_v22, %v789_v21  ;;  %p578_p3 = por %p577_p2, %p576_p1 }
  0xfd   :  { %v174_v27 = vsel %vm172_vm6, %v173_v25, %v792_v23 }
  0xfe   :  { %v175_v28 = vadd.s32 %v174_v27, %v170_v26  ;;  %p579_p4 = pnand %p578_p3, %p572_p0 }
 0x100   :  { %v176_v29 = vadd.s32 536870912, %v175_v28 }
 0x102   :  { %v177_v30 = vshrl.u32 %v176_v29, 30 }
 0x104   :  { %v178_v31 = vshll.u32 %v177_v30, 30  ;;  %v201_v57 = vsub.s32 4, %v177_v30 }
 0x106   :  { %v179_v32 = vsub.s32 %v175_v28, %v178_v31  ;;  %v202_v61 = vsel %vm117_vm8, %v201_v57, %v177_v30 }
 0x107   :  { %v204_v63 = vsel %vm116_vm9, 0, %v202_v61 }
 0x108   :  { %v181_v33 = vsub.s32 0, %v179_v32  ;;  %v208_v0 = vadd.s32 3, %v204_v63 }
 0x10a   :  { %v434_v34 = vmin.u32 %v181_v33, %v179_v32  ;;  %v209_v1 = vand.u32 3, %v208_v0 }
 0x10c   :  { %v183_v35 = vclz %v434_v34  ;;  %vm214_vm10 = vcmp.eq.s32.totalorder %v209_v1, 2  ;;  %vm211_vm11 = vcmp.eq.s32.totalorder %v209_v1, 0  ;;  %vm210_vm12 = vcmp.lt.s32.totalorder %v209_v1, 2 }
 0x10e   :  { %v435_v37 = vadd.s32 4294967294, %v183_v35 }
 0x110   :  { %vm436_vm7 = vcmp.lt.s32.totalorder %v435_v37, 0 }
 0x111   :  { %v186_v38 = vsel %vm436_vm7, 0, %v435_v37 }
 0x112   :  { %v187_v40 = vsub.s32 32, %v186_v38  ;;  %v191_v41 = vsub.s32 4294967266, %v186_v38  ;;  %v188_v43 = vshll.u32 %v179_v32, %v186_v38 }
 0x114   :  { %v189_v44 = vshrl.u32 %v171_v39, %v187_v40  ;;  %v192_v45 = vadd.s32 127, %v191_v41 }
 0x116   :  { %v190_v46 = vor.u32 %v189_v44, %v188_v43  ;;  %v193_v47 = vshll.u32 %v192_v45, 23 }
 0x118   :  { %v194_v49 = vor.u32 4788187, %v193_v47  ;;  %v197_v52 = vcvt.s32.f32 %v190_v46 }
 0x11a   :  { %v195_v51 = vand.u32 2147483647, %v194_v49 }
 0x11c   :  { %v198_v54 = vmul.f32 %v197_v52, %v195_v51 }
 0x11e   :  { %v199_v55 = vxor.u32 2147483648, %v198_v54 }
 0x120   :  { %v200_v58 = vsel %vm117_vm8, %v199_v55, %v198_v54 }
 0x121   :  { %v203_v60 = vsel %vm116_vm9, %v771_v36, %v200_v58 }
 0x122   :  { %563 = vcosq.f32 %v203_v60 }
 0x123   :  { %565 = vsinq.f32 %v203_v60 }
 0x12f   :  { %v564_v2 = vpop.eup %563 }
 0x130   :  { %v566_v3 = vpop.eup %565  ;;  %v215_v4 = vxor.u32 2147483648, %v564_v2 }
 0x131   :  { %v212_v5 = vxor.u32 2147483648, %v566_v3 }
 0x132   :  { %v216_v6 = vsel %vm214_vm10, %v215_v4, %v566_v3 }
 0x133   :  { %v213_v7 = vsel %vm211_vm11, %v564_v2, %v212_v5 }
 0x134   :  { %v217_v42 = vsel %vm210_vm12, %v213_v7, %v216_v6 }
 0x135   :  { %v218_v8 = vsel %vm207_vm13, nan, %v217_v42 }
 0x136   :  { %544 = vmatmul.mubr.f32.vlgmr.msra.gmra.mxu1 %v218_v8 }
 0x1f6   :  { %v308_v10 = vpop.f32.mrf.mxu1 }
 0x1f7   :  { %v806_v11 = vadd.f32 %v437_v9, %v308_v10 }
 0x1f8   :  { %v545_v12 = vpop.f32.mrf.mxu1 }
 0x1f9   :  { %v315_v13 = vand.u32 2139095040, %v806_v11  ;;  %v312_v18 = vand.u32 2147483647, %v806_v11  ;;  %vm314_vm5 = vcmp.lt.s32.totalorder %v806_v11, 0  ;;  %vm404_vm10 = vweird.f32 %v806_v11 }
 0x1fb   :  { %v316_v14 = vshrl.u32 %v315_v13, 23  ;;  %v319_v20 = vand.u32 8388607, %v312_v18  ;;  %vm313_vm6 = vcmp.le.f32.partialorder %v312_v18, 0.7853982 }
 0x1fd   :  { %v438_v15 = vadd.s32 4294967169, %v316_v14  ;;  %v320_v33 = vor.u32 8388608, %v319_v20 }
 0x1ff   :  { %v322_v16 = vadd.s32 1, %v438_v15 }
 0x201   :  { %vm323_vm14 = vcmp.gt.s32.totalorder %v322_v16, 0 }
 0x202   :  { %v324_v36 = vsel %vm323_vm14, %v322_v16, 0 }
 0x203   :  { %v326_v19 = vand.u32 31, %v324_v36  ;;  %v325_v22 = vshrl.u32 %v324_v36, 5 }
 0x205   :  { %v327_v21 = vsub.s32 32, %v326_v19  ;;  %v329_v23 = vshll.u32 %v595_v48, %v326_v19  ;;  %v332_v24 = vshll.u32 %v596_v50, %v326_v19  ;;  %v335_v27 = vshll.u32 %v597_v53, %v326_v19 }
 0x206   :  { %v338_v29 = vshll.u32 %v598_v56, %v326_v19  ;;  %v341_v31 = vshll.u32 %v599_v59, %v326_v19  ;;  %vm344_vm15 = vcmp.lt.s32.totalorder %v325_v22, 1  ;;  %vm347_vm0 = vcmp.lt.s32.totalorder %v325_v22, 4 }
 0x207   :  { %v330_v25 = vshrl.u32 %v596_v50, %v327_v21  ;;  %v333_v26 = vshrl.u32 %v597_v53, %v327_v21  ;;  %v336_v28 = vshrl.u32 %v598_v56, %v327_v21  ;;  %v339_v30 = vshrl.u32 %v599_v59, %v327_v21 }
 0x208   :  { %v342_v32 = vshrl.u32 %v600_v62, %v327_v21  ;;  %v328_v41 = vshrl.u32 %v595_v48, %v327_v21  ;;  %vm346_vm1 = vcmp.lt.s32.totalorder %v325_v22, 3  ;;  %vm345_vm2 = vcmp.lt.s32.totalorder %v325_v22, 2 }
 0x209   :  { %v331_v34 = vor.u32 %v330_v25, %v329_v23  ;;  %v334_v35 = vor.u32 %v333_v26, %v332_v24  ;;  %v337_v37 = vor.u32 %v336_v28, %v335_v27  ;;  %v340_v38 = vor.u32 %v339_v30, %v338_v29 }
 0x20a   :  { %v343_v50 = vor.u32 %v342_v32, %v341_v31  ;;  %v360_v62 = vshll.u32 %v320_v33, 8 }
 0x20b   :  { %v349_v39 = vsel %vm347_vm0, %v337_v37, 2102212464  ;;  %v352_v53 = vsel %vm344_vm15, %v331_v34, %v334_v35  ;;  %v356_v40 = vsel %vm344_vm15, %v334_v35, %v337_v37  ;;  %v353_v56 = vsel %vm347_vm0, %v340_v38, 920167782 }
 0x20c   :  { %v357_v43 = vsel %vm347_vm0, %v343_v50, 1326507024  ;;  %v354_v59 = vsel %vm346_vm1, %v337_v37, %v353_v56  ;;  %v348_v45 = vsel %vm344_vm15, %v328_v41, %v331_v34  ;;  %v350_v46 = vsel %vm346_vm1, %v334_v35, %v349_v39 }
 0x20d   :  { %v358_v44 = vsel %vm346_vm1, %v340_v38, %v357_v43  ;;  %v355_v47 = vsel %vm345_vm2, %v352_v53, %v354_v59  ;;  %v351_v57 = vsel %vm345_vm2, %v348_v45, %v350_v46 }
 0x20e   :  { %v359_v49 = vsel %vm345_vm2, %v356_v40, %v358_v44  ;;  %v826_v54 = vmul.u32.u64.low %v360_v62, %v355_v47  ;;  %v827_v55 = vmul.u32.u64.high %v360_v62, %v355_v47, %v826_v54  ;;  %v367_v58 = vmul.u32 %v360_v62, %v351_v57 }
 0x20f   :  { %v823_v51 = vmul.u32.u64.low %v360_v62, %v359_v49  ;;  %v824_v52 = vmul.u32.u64.high %v360_v62, %v359_v49, %v823_v51 }
 0x210   :  { %v370_v48 = vadd.s32 1, %v827_v55 }
 0x211   :  { %vm369_vm3 = vc.u32 %v824_v52, %v826_v54  ;;  %v368_v42 = vadd.s32 %v826_v54, %v824_v52 }
 0x212   :  { %v371_v60 = vsel %vm369_vm3, %v370_v48, %v827_v55 }
 0x213   :  { %v372_v61 = vadd.s32 %v371_v60, %v367_v58 }
 0x215   :  { %v373_v63 = vadd.s32 536870912, %v372_v61 }
 0x217   :  { %v374_v0 = vshrl.u32 %v373_v63, 30 }
 0x219   :  { %v375_v1 = vshll.u32 %v374_v0, 30  ;;  %v398_v22 = vsub.s32 4, %v374_v0 }
 0x21b   :  { %v376_v2 = vsub.s32 %v372_v61, %v375_v1  ;;  %v399_v25 = vsel %vm314_vm5, %v398_v22, %v374_v0 }
 0x21c   :  { %v401_v26 = vsel %vm313_vm6, 0, %v399_v25 }
 0x21d   :  { %v378_v3 = vsub.s32 0, %v376_v2  ;;  %v405_v27 = vadd.s32 3, %v401_v26 }
 0x21f   :  { %v439_v4 = vmin.u32 %v378_v3, %v376_v2  ;;  %v406_v28 = vand.u32 3, %v405_v27 }
 0x221   :  { %v380_v5 = vclz %v439_v4  ;;  %vm411_vm7 = vcmp.eq.s32.totalorder %v406_v28, 2  ;;  %vm408_vm8 = vcmp.eq.s32.totalorder %v406_v28, 0  ;;  %vm407_vm9 = vcmp.lt.s32.totalorder %v406_v28, 2 }
 0x223   :  { %v440_v6 = vadd.s32 4294967294, %v380_v5 }
 0x225   :  { %vm441_vm4 = vcmp.lt.s32.totalorder %v440_v6, 0 }
 0x226   :  { %v383_v7 = vsel %vm441_vm4, 0, %v440_v6 }
 0x227   :  { %v384_v8 = vsub.s32 32, %v383_v7  ;;  %v388_v9 = vsub.s32 4294967266, %v383_v7  ;;  %v385_v10 = vshll.u32 %v376_v2, %v383_v7 }
 0x229   :  { %v386_v12 = vshrl.u32 %v368_v42, %v384_v8  ;;  %v389_v13 = vadd.s32 127, %v388_v9 }
 0x22b   :  { %v387_v14 = vor.u32 %v386_v12, %v385_v10  ;;  %v390_v15 = vshll.u32 %v389_v13, 23 }
 0x22d   :  { %v391_v16 = vor.u32 4788187, %v390_v15  ;;  %v394_v19 = vcvt.s32.f32 %v387_v14 }
 0x22f   :  { %v392_v36 = vand.u32 2147483647, %v391_v16 }
 0x231   :  { %v395_v20 = vmul.f32 %v394_v19, %v392_v36 }
 0x233   :  { %v396_v21 = vxor.u32 2147483648, %v395_v20 }
 0x235   :  { %v397_v23 = vsel %vm314_vm5, %v396_v21, %v395_v20 }
 0x236   :  { %v400_v24 = vsel %vm313_vm6, %v806_v11, %v397_v23 }
 0x237   :  { %567 = vcosq.f32 %v400_v24 }
 0x238   :  { %569 = vsinq.f32 %v400_v24 }
 0x244   :  { %v568_v29 = vpop.eup %567 }
 0x245   :  { %v570_v30 = vpop.eup %569  ;;  %v412_v31 = vxor.u32 2147483648, %v568_v29 }
 0x246   :  { %v409_v32 = vxor.u32 2147483648, %v570_v30 }
 0x247   :  { %v413_v33 = vsel %vm411_vm7, %v412_v31, %v570_v30 }
 0x248   :  { %v410_v34 = vsel %vm408_vm8, %v568_v29, %v409_v32 }
 0x249   :  { %v414_v18 = vsel %vm407_vm9, %v410_v34, %v413_v33 }
 0x24a   :  { %v415_v35 = vsel %vm404_vm10, nan, %v414_v18 }
 0x24b   :  { %v416_v37 = vadd.f32 %v415_v35, %v701_v17 }
 0x24d   :  { %417 = vst [vmem:[#allocation2] sm:$0xff] %v416_v37 }
 0x24e   :  { %582 = shalt.err (!%p579_p4)
}
 0x24f   :  { %427 = dma.vmem_to_hbm [thread:$0]  %s425_s7, 128, %s847_s5, [#allocation3]  }
 0x250   :  { %591 = dma.done.wait [#allocation3], 128  }
 0x251   :  { %592 = vsyncadd [#allocation3], 4294967168 }
 0x252   :  { %431 = vsyncpa [#allocation3], 1 }

</bundles_post_ra>
